<compile_context>
chip_gen: v5e
topology: v5e:2x2
jax: 0.10.0
libtpu: 0.0.40
codegen_flags: <defaults>
</compile_context>

<pallas_src>
import jax
import jax.numpy as jnp
from jax.experimental import pallas as pl
from jax.experimental.pallas import tpu as pltpu

N_ATOM_FEATURES = 30   # GNN_node.N_atom_features
N_ATOM_PAD = 32        # padded K for the node encoder matmul
EMB_DIM = 32           # emb_dim
EDGE_DIM = 8           # edge_attr feature dim fed to edge_encoder
NUM_LAYER = 2          # num_layer (must be >= 2)
N_NODES = 32
N_EDGES = 64
BN_EPS = 1e-5

# rows per layer inside the packed weight slab: edge-enc W, folded W1, folded W2
_LAYER_W_ROWS = EDGE_DIM + EMB_DIM + EMB_DIM
_WPACK_ROWS = N_ATOM_PAD + NUM_LAYER * _LAYER_W_ROWS          # 32 + 2*72 = 176

VMEM = pl.BlockSpec(memory_space=pltpu.MemorySpace.VMEM)
SMEM = pl.BlockSpec(memory_space=pltpu.MemorySpace.SMEM)


# ------------------------------ fused kernel ------------------------------- #
def _gnn_fused_kernel(x_ref, gmat_ref, smat_ref, eattr_ref,
                      wpack_ref, bpack_ref, eps_ref, out_ref):
    """Node encoder + NUM_LAYER GIN conv layers, fully fused (h lives in vregs)."""
    gmat = gmat_ref[...]        # (E, N) one-hot of src  (gather operator)
    smat = smat_ref[...]        # (N, E) one-hot of dst  (scatter-add operator)
    eattr = eattr_ref[...]      # (E, EDGE_DIM)

    # node_encoder: Linear(N_atom_features -> emb_dim, bias=False), K padded to 32.
    h = jnp.dot(x_ref[...], wpack_ref[0:N_ATOM_PAD, :],
                preferred_element_type=jnp.float32)

    row = N_ATOM_PAD
    for layer in range(NUM_LAYER):                     # statically unrolled
        we = wpack_ref[row:row + EDGE_DIM, :]; row += EDGE_DIM
        w1 = wpack_ref[row:row + EMB_DIM, :];  row += EMB_DIM
        w2 = wpack_ref[row:row + EMB_DIM, :];  row += EMB_DIM
        be = bpack_ref[3 * layer + 0: 3 * layer + 1, :]   # (1, emb)
        b1 = bpack_ref[3 * layer + 1: 3 * layer + 2, :]
        b2 = bpack_ref[3 * layer + 2: 3 * layer + 3, :]

        # edge_encoder(edge_attr): (E, edge_dim) @ (edge_dim, emb) + b
        edge_emb = jnp.dot(eattr, we, preferred_element_type=jnp.float32) + be
        # gather h[src] via one-hot matmul; message = relu(x_j + e)
        x_src = jnp.dot(gmat, h, preferred_element_type=jnp.float32)
        msg = jnp.maximum(x_src + edge_emb, 0.0)
        # scatter-add to destination nodes: (N, E) @ (E, emb)
        agg = jnp.dot(smat, msg, preferred_element_type=jnp.float32)
        # GIN combine: (1 + eps) * h + aggregated messages
        pre = (1.0 + eps_ref[layer]) * h + agg
        # GIN MLP, BatchNorms folded into the Linears (eval mode, exact):
        #   Linear1+BN1 -> ReLU -> Linear2+BN_outer
        t = jnp.dot(pre, w1, preferred_element_type=jnp.float32) + b1
        t = jnp.maximum(t, 0.0)
        t = jnp.dot(t, w2, preferred_element_type=jnp.float32) + b2
        # TODO(synk): F.dropout(training=True) and batch-statistics BN are
        # stochastic/batch-dependent; eval-mode semantics used here
        # (dropout = identity, BN = running stats).
        if layer != NUM_LAYER - 1:
            t = jnp.maximum(t, 0.0)    # outer ReLU on all but the last layer
        h = t

    # NOTE: single (32,32) = 4 KB final store; a lane-dense (8,128) repack would
    # need an in-kernel cross-lane relayout for a negligible gain at this size.
    out_ref[...] = h


# --------------------------- host-side param prep -------------------------- #
def _fold_and_pack_params(w_enc, layer_params):
    """Fold eval-mode BatchNorms into the adjacent Linears and pack everything
    into one weight slab, one bias slab and one eps vector."""
    w_rows = [jnp.pad(w_enc, ((0, N_ATOM_PAD - N_ATOM_FEATURES), (0, 0)))]
    b_rows = []
    eps = []
    for p in layer_params:
        s1 = p["bn1_g"] * jax.lax.rsqrt(p["bn1_v"] + BN_EPS)      # (1, emb)
        so = p["bno_g"] * jax.lax.rsqrt(p["bno_v"] + BN_EPS)
        w1f = p["w1"] * s1                                        # scale out cols
        b1f = (p["b1"] - p["bn1_m"]) * s1 + p["bn1_b"]
        w2f = p["w2"] * so
        b2f = (p["b2"] - p["bno_m"]) * so + p["bno_b"]
        w_rows += [p["we"], w1f, w2f]
        b_rows += [p["be"], b1f, b2f]
        eps.append(p["eps"])
    wpack = jnp.concatenate(w_rows, axis=0)       # (176, emb)
    bpack = jnp.concatenate(b_rows, axis=0)       # (3*num_layer, emb)
    eps_vec = jnp.concatenate(eps, axis=0)        # (num_layer,)
    assert wpack.shape[0] == _WPACK_ROWS
    return wpack, bpack, eps_vec


# ------------------------------- full forward ------------------------------ #
def gnn_node_forward(x, edge_index, edge_attr, w_enc, layer_params):
    n = x.shape[0]
    src, dst = edge_index[0], edge_index[1]
    # Dense one-hot gather/scatter operators (fine at toy size; scatter built
    # directly as (N, E) via axis=0 -> no XLA transpose materialized).
    gmat = jax.nn.one_hot(src, n, dtype=jnp.float32)              # (E, N)
    smat = jax.nn.one_hot(dst, n, dtype=jnp.float32, axis=0)      # (N, E)

    x_pad = jnp.pad(x, ((0, 0), (0, N_ATOM_PAD - N_ATOM_FEATURES)))
    wpack, bpack, eps_vec = _fold_and_pack_params(w_enc, layer_params)

    return pl.pallas_call(
        _gnn_fused_kernel,
        out_shape=jax.ShapeDtypeStruct((n, EMB_DIM), jnp.float32),
        in_specs=[VMEM,                 # x (padded)
                  VMEM, VMEM,           # gather / scatter one-hots
                  VMEM,                 # edge_attr
                  VMEM, VMEM,           # packed weights, packed biases
                  SMEM],                # per-layer eps scalars
        out_specs=VMEM,
    )(x_pad, gmat, smat, edge_attr, wpack, bpack, eps_vec)


# ----------------------------- param construction -------------------------- #
def make_params(key):
    keys = jax.random.split(key, 1 + 6 * NUM_LAYER)
    w_enc = jax.random.normal(keys[0], (N_ATOM_FEATURES, EMB_DIM),
                              jnp.float32) * 0.1
    layer_params = []
    for layer in range(NUM_LAYER):
        k = keys[1 + 6 * layer: 1 + 6 * (layer + 1)]
        p = {
            # edge encoder Linear(EDGE_DIM -> EMB_DIM)  (stored pre-transposed)
            "we": jax.random.normal(k[0], (EDGE_DIM, EMB_DIM), jnp.float32) * 0.1,
            "be": jax.random.normal(k[1], (1, EMB_DIM), jnp.float32) * 0.1,
            # GIN MLP Linear(EMB -> EMB) x2
            "w1": jax.random.normal(k[2], (EMB_DIM, EMB_DIM), jnp.float32) * 0.1,
            "b1": jax.random.normal(k[3], (1, EMB_DIM), jnp.float32) * 0.1,
            "w2": jax.random.normal(k[4], (EMB_DIM, EMB_DIM), jnp.float32) * 0.1,
            "b2": jax.random.normal(k[5], (1, EMB_DIM), jnp.float32) * 0.1,
            # BN params (fresh init: gamma=1, beta=0, running mean=0, var=1)
            "bn1_g": jnp.ones((1, EMB_DIM), jnp.float32),
            "bn1_b": jnp.zeros((1, EMB_DIM), jnp.float32),
            "bn1_m": jnp.zeros((1, EMB_DIM), jnp.float32),
            "bn1_v": jnp.ones((1, EMB_DIM), jnp.float32),
            "bno_g": jnp.ones((1, EMB_DIM), jnp.float32),
            "bno_b": jnp.zeros((1, EMB_DIM), jnp.float32),
            "bno_m": jnp.zeros((1, EMB_DIM), jnp.float32),
            "bno_v": jnp.ones((1, EMB_DIM), jnp.float32),
            # GIN eps (torch init: 0.0)
            "eps": jnp.zeros((1,), jnp.float32),
        }
        layer_params.append(p)
    return w_enc, layer_params


if __name__ == "__main__":
    key = jax.random.PRNGKey(0)
    k_x, k_src, k_dst, k_ea, k_p = jax.random.split(key, 5)

    x = jax.random.normal(k_x, (N_NODES, N_ATOM_FEATURES), jnp.float32)
    src = jax.random.randint(k_src, (N_EDGES,), 0, N_NODES, jnp.int32)
    dst = jax.random.randint(k_dst, (N_EDGES,), 0, N_NODES, jnp.int32)
    edge_index = jnp.stack([src, dst], axis=0)               # (2, E)
    edge_attr = jax.random.normal(k_ea, (N_EDGES, EDGE_DIM), jnp.float32)

    w_enc, layer_params = make_params(k_p)

    fwd = jax.jit(gnn_node_forward)
    out = fwd(x, edge_index, edge_attr, w_enc, layer_params)
    out = jax.block_until_ready(out)
    assert out.shape == (N_NODES, EMB_DIM) and out.dtype == jnp.float32
    print("KERNEL_OK")
</pallas_src>

<mosaic_0001>
module attributes {stable_mosaic.version = 11 : i64} {
  func.func @_gnn_fused_kernel(%arg0: memref<32x32xf32, #tpu.memory_space<vmem>>, %arg1: memref<64x32xf32, #tpu.memory_space<vmem>>, %arg2: memref<32x64xf32, #tpu.memory_space<vmem>>, %arg3: memref<64x8xf32, #tpu.memory_space<vmem>>, %arg4: memref<176x32xf32, #tpu.memory_space<vmem>>, %arg5: memref<6x32xf32, #tpu.memory_space<vmem>>, %arg6: memref<2xf32, #tpu.memory_space<smem>>, %arg7: memref<32x32xf32, #tpu.memory_space<vmem>>) attributes {dimension_semantics = [], scalar_prefetch = 0 : i64, scratch_operands = 0 : i64, tpu.core_type = #tpu.core_type<tc>} {
    %c0 = arith.constant 0 : index
    %c0_0 = arith.constant 0 : index
    %0 = vector.load %arg1[%c0, %c0_0] : memref<64x32xf32, #tpu.memory_space<vmem>>, vector<64x32xf32>
    %c0_1 = arith.constant 0 : index
    %c0_2 = arith.constant 0 : index
    %1 = vector.load %arg2[%c0_1, %c0_2] : memref<32x64xf32, #tpu.memory_space<vmem>>, vector<32x64xf32>
    %c0_3 = arith.constant 0 : index
    %c0_4 = arith.constant 0 : index
    %2 = vector.load %arg3[%c0_3, %c0_4] : memref<64x8xf32, #tpu.memory_space<vmem>>, vector<64x8xf32>
    %c0_5 = arith.constant 0 : index
    %c0_6 = arith.constant 0 : index
    %3 = vector.load %arg0[%c0_5, %c0_6] : memref<32x32xf32, #tpu.memory_space<vmem>>, vector<32x32xf32>
    %c0_7 = arith.constant 0 : index
    %c0_8 = arith.constant 0 : index
    %4 = vector.load %arg4[%c0_7, %c0_8] : memref<176x32xf32, #tpu.memory_space<vmem>>, vector<32x32xf32>
    %cst = arith.constant dense<0.000000e+00> : vector<32x32xf32>
    %5 = tpu.matmul %3, %4, %cst {dimension_numbers = #tpu.dot_dimension_numbers<[1], [0], [0], [1], [0, 0, 1, 1], [], []>} : vector<32x32xf32>, vector<32x32xf32>, vector<32x32xf32> -> vector<32x32xf32>
    %c32 = arith.constant 32 : index
    %c0_9 = arith.constant 0 : index
    %6 = vector.load %arg4[%c32, %c0_9] : memref<176x32xf32, #tpu.memory_space<vmem>>, vector<8x32xf32>
    %c40 = arith.constant 40 : index
    %c0_10 = arith.constant 0 : index
    %7 = vector.load %arg4[%c40, %c0_10] : memref<176x32xf32, #tpu.memory_space<vmem>>, vector<32x32xf32>
    %c72 = arith.constant 72 : index
    %c0_11 = arith.constant 0 : index
    %8 = vector.load %arg4[%c72, %c0_11] : memref<176x32xf32, #tpu.memory_space<vmem>>, vector<32x32xf32>
    %c0_12 = arith.constant 0 : index
    %c0_13 = arith.constant 0 : index
    %9 = vector.load %arg5[%c0_12, %c0_13] : memref<6x32xf32, #tpu.memory_space<vmem>>, vector<1x32xf32>
    %c1 = arith.constant 1 : index
    %c0_14 = arith.constant 0 : index
    %10 = vector.load %arg5[%c1, %c0_14] : memref<6x32xf32, #tpu.memory_space<vmem>>, vector<1x32xf32>
    %c2 = arith.constant 2 : index
    %c0_15 = arith.constant 0 : index
    %11 = vector.load %arg5[%c2, %c0_15] : memref<6x32xf32, #tpu.memory_space<vmem>>, vector<1x32xf32>
    %cst_16 = arith.constant dense<0.000000e+00> : vector<64x32xf32>
    %12 = tpu.matmul %2, %6, %cst_16 {dimension_numbers = #tpu.dot_dimension_numbers<[1], [0], [0], [1], [0, 0, 1, 1], [], []>} : vector<64x8xf32>, vector<8x32xf32>, vector<64x32xf32> -> vector<64x32xf32>
    %13 = vector.broadcast %9 : vector<1x32xf32> to vector<64x32xf32>
    %14 = arith.addf %12, %13 : vector<64x32xf32>
    %cst_17 = arith.constant dense<0.000000e+00> : vector<64x32xf32>
    %15 = tpu.matmul %0, %5, %cst_17 {dimension_numbers = #tpu.dot_dimension_numbers<[1], [0], [0], [1], [0, 0, 1, 1], [], []>} : vector<64x32xf32>, vector<32x32xf32>, vector<64x32xf32> -> vector<64x32xf32>
    %16 = arith.addf %15, %14 : vector<64x32xf32>
    %cst_18 = arith.constant 0.000000e+00 : f32
    %17 = vector.broadcast %cst_18 : f32 to vector<64x32xf32>
    %18 = arith.maximumf %16, %17 : vector<64x32xf32>
    %cst_19 = arith.constant dense<0.000000e+00> : vector<32x32xf32>
    %19 = tpu.matmul %1, %18, %cst_19 {dimension_numbers = #tpu.dot_dimension_numbers<[1], [0], [0], [1], [0, 0, 1, 1], [], []>} : vector<32x64xf32>, vector<64x32xf32>, vector<32x32xf32> -> vector<32x32xf32>
    %c0_20 = arith.constant 0 : index
    %20 = memref.load %arg6[%c0_20] : memref<2xf32, #tpu.memory_space<smem>>
    %cst_21 = arith.constant 1.000000e+00 : f32
    %21 = arith.addf %cst_21, %20 : f32
    %22 = vector.broadcast %21 : f32 to vector<32x32xf32>
    %23 = arith.mulf %22, %5 : vector<32x32xf32>
    %24 = arith.addf %23, %19 : vector<32x32xf32>
    %cst_22 = arith.constant dense<0.000000e+00> : vector<32x32xf32>
    %25 = tpu.matmul %24, %7, %cst_22 {dimension_numbers = #tpu.dot_dimension_numbers<[1], [0], [0], [1], [0, 0, 1, 1], [], []>} : vector<32x32xf32>, vector<32x32xf32>, vector<32x32xf32> -> vector<32x32xf32>
    %26 = vector.broadcast %10 : vector<1x32xf32> to vector<32x32xf32>
    %27 = arith.addf %25, %26 : vector<32x32xf32>
    %cst_23 = arith.constant 0.000000e+00 : f32
    %28 = vector.broadcast %cst_23 : f32 to vector<32x32xf32>
    %29 = arith.maximumf %27, %28 : vector<32x32xf32>
    %cst_24 = arith.constant dense<0.000000e+00> : vector<32x32xf32>
    %30 = tpu.matmul %29, %8, %cst_24 {dimension_numbers = #tpu.dot_dimension_numbers<[1], [0], [0], [1], [0, 0, 1, 1], [], []>} : vector<32x32xf32>, vector<32x32xf32>, vector<32x32xf32> -> vector<32x32xf32>
    %31 = vector.broadcast %11 : vector<1x32xf32> to vector<32x32xf32>
    %32 = arith.addf %30, %31 : vector<32x32xf32>
    %cst_25 = arith.constant 0.000000e+00 : f32
    %33 = vector.broadcast %cst_25 : f32 to vector<32x32xf32>
    %34 = arith.maximumf %32, %33 : vector<32x32xf32>
    %c104 = arith.constant 104 : index
    %c0_26 = arith.constant 0 : index
    %35 = vector.load %arg4[%c104, %c0_26] : memref<176x32xf32, #tpu.memory_space<vmem>>, vector<8x32xf32>
    %c112 = arith.constant 112 : index
    %c0_27 = arith.constant 0 : index
    %36 = vector.load %arg4[%c112, %c0_27] : memref<176x32xf32, #tpu.memory_space<vmem>>, vector<32x32xf32>
    %c144 = arith.constant 144 : index
    %c0_28 = arith.constant 0 : index
    %37 = vector.load %arg4[%c144, %c0_28] : memref<176x32xf32, #tpu.memory_space<vmem>>, vector<32x32xf32>
    %c3 = arith.constant 3 : index
    %c0_29 = arith.constant 0 : index
    %38 = vector.load %arg5[%c3, %c0_29] : memref<6x32xf32, #tpu.memory_space<vmem>>, vector<1x32xf32>
    %c4 = arith.constant 4 : index
    %c0_30 = arith.constant 0 : index
    %39 = vector.load %arg5[%c4, %c0_30] : memref<6x32xf32, #tpu.memory_space<vmem>>, vector<1x32xf32>
    %c5 = arith.constant 5 : index
    %c0_31 = arith.constant 0 : index
    %40 = vector.load %arg5[%c5, %c0_31] : memref<6x32xf32, #tpu.memory_space<vmem>>, vector<1x32xf32>
    %cst_32 = arith.constant dense<0.000000e+00> : vector<64x32xf32>
    %41 = tpu.matmul %2, %35, %cst_32 {dimension_numbers = #tpu.dot_dimension_numbers<[1], [0], [0], [1], [0, 0, 1, 1], [], []>} : vector<64x8xf32>, vector<8x32xf32>, vector<64x32xf32> -> vector<64x32xf32>
    %42 = vector.broadcast %38 : vector<1x32xf32> to vector<64x32xf32>
    %43 = arith.addf %41, %42 : vector<64x32xf32>
    %cst_33 = arith.constant dense<0.000000e+00> : vector<64x32xf32>
    %44 = tpu.matmul %0, %34, %cst_33 {dimension_numbers = #tpu.dot_dimension_numbers<[1], [0], [0], [1], [0, 0, 1, 1], [], []>} : vector<64x32xf32>, vector<32x32xf32>, vector<64x32xf32> -> vector<64x32xf32>
    %45 = arith.addf %44, %43 : vector<64x32xf32>
    %cst_34 = arith.constant 0.000000e+00 : f32
    %46 = vector.broadcast %cst_34 : f32 to vector<64x32xf32>
    %47 = arith.maximumf %45, %46 : vector<64x32xf32>
    %cst_35 = arith.constant dense<0.000000e+00> : vector<32x32xf32>
    %48 = tpu.matmul %1, %47, %cst_35 {dimension_numbers = #tpu.dot_dimension_numbers<[1], [0], [0], [1], [0, 0, 1, 1], [], []>} : vector<32x64xf32>, vector<64x32xf32>, vector<32x32xf32> -> vector<32x32xf32>
    %c1_36 = arith.constant 1 : index
    %49 = memref.load %arg6[%c1_36] : memref<2xf32, #tpu.memory_space<smem>>
    %cst_37 = arith.constant 1.000000e+00 : f32
    %50 = arith.addf %cst_37, %49 : f32
    %51 = vector.broadcast %50 : f32 to vector<32x32xf32>
    %52 = arith.mulf %51, %34 : vector<32x32xf32>
    %53 = arith.addf %52, %48 : vector<32x32xf32>
    %cst_38 = arith.constant dense<0.000000e+00> : vector<32x32xf32>
    %54 = tpu.matmul %53, %36, %cst_38 {dimension_numbers = #tpu.dot_dimension_numbers<[1], [0], [0], [1], [0, 0, 1, 1], [], []>} : vector<32x32xf32>, vector<32x32xf32>, vector<32x32xf32> -> vector<32x32xf32>
    %55 = vector.broadcast %39 : vector<1x32xf32> to vector<32x32xf32>
    %56 = arith.addf %54, %55 : vector<32x32xf32>
    %cst_39 = arith.constant 0.000000e+00 : f32
    %57 = vector.broadcast %cst_39 : f32 to vector<32x32xf32>
    %58 = arith.maximumf %56, %57 : vector<32x32xf32>
    %cst_40 = arith.constant dense<0.000000e+00> : vector<32x32xf32>
    %59 = tpu.matmul %58, %37, %cst_40 {dimension_numbers = #tpu.dot_dimension_numbers<[1], [0], [0], [1], [0, 0, 1, 1], [], []>} : vector<32x32xf32>, vector<32x32xf32>, vector<32x32xf32> -> vector<32x32xf32>
    %60 = vector.broadcast %40 : vector<1x32xf32> to vector<32x32xf32>
    %61 = arith.addf %59, %60 : vector<32x32xf32>
    %c0_41 = arith.constant 0 : index
    %c0_42 = arith.constant 0 : index
    %62 = vector.load %arg7[%c0_41, %c0_42] : memref<32x32xf32, #tpu.memory_space<vmem>>, vector<32x32xf32>
    tpu.vector_store %arg7[%c0_41, %c0_42], %61 {strides = array<i32>} : memref<32x32xf32, #tpu.memory_space<vmem>>, vector<32x32xf32>,
    return
  }
}

</mosaic_0001>

<bundles_post_ra>
// kernel: gnn_node_forward.1
= control target key start
LH: loop header
LB: loop body
LE: loop exit
PB: predicated region body
PF: predicated region fallthrough
CT: control target
= control target key end

     0   :  { %12 = vsyncpa [#allocation4], 0  ;;  %s1178_s0 = inlined_call_operand.vmem [shape: f32[32,32], index: 0, kind: input, shape index: {}]   ;;  %s1179_s1 = inlined_call_operand.vmem [shape: f32[64,32], index: 1, kind: input, shape index: {}]   ;;  %s1180_s2 = inlined_call_operand.vmem [shape: f32[32,64], index: 2, kind: input, shape index: {}]   ;;  %s1181_s3 = inlined_call_operand.vmem [shape: f32[64,8], index: 3, kind: input, shape index: {}]   ;;  %s1182_s4 = inlined_call_operand.vmem [shape: f32[176,32], index: 4, kind: input, shape index: {}]   ;;  %s1183_s5 = inlined_call_operand.vmem [shape: f32[6,32], index: 5, kind: input, shape index: {}]   ;;  %s1184_s6 = inlined_call_operand.vmem [shape: f32[2], index: 6, kind: input, shape index: {}]   ;;  %s1185_s7 = inlined_call_operand.hbm [shape: f32[32,32], index: 7, kind: output, shape index: {}]  }
   0x1   :  { %13 = vsyncpa [#allocation3], 0  ;;  %s31_s26 = sshll.u32 %s1184_s6, 4  ;;  %s780_s27 = smov [#allocation2]   ;;  %s32_s26 = int_to_ptr.vmem [resolvable:$true] %s31_s26 }
   0x2   :  { %34 = dma.vmem_to_smem %s32_s26, 16, %s780_s27, [#allocation4]  }
   0x3   :  { %776 = dma.done.wait [#allocation4], 16  }
   0x4   :  { %777 = vsyncadd [#allocation4], 4294967280 }
   0x5   :  { %39 = sfence }
   0x6   :  { %v67_v0 = vld [vmem:[%s1182_s4 + $0x18] sm:$0xff]  ;;  %v66_v1 = vld [vmem:[%s1182_s4 + $0x10] sm:$0xff]  ;;  %v65_v2 = vld [vmem:[%s1182_s4 + $0x8] sm:$0xff]  ;;  %vm68_vm0 = vcmask 261120   ;;  %vm123_vm1 = vcmask 64512   ;;  %vm262_vm2 = vcmask 523264  }
   0x7   :  { %722 = vmatpush.msra.mxu3 %v67_v0  ;;  %93 = vmatpush.msra.mxu0 %v67_v0  ;;  %v64_v3 = vld [vmem:[%s1182_s4] sm:$0xff]  ;;  %v61_v4 = vld [vmem:[%s1178_s0 + $0x8] sm:$0xff]  ;;  %v62_v6 = vld [vmem:[%s1178_s0 + $0x10] sm:$0xff]  ;;  %s304_s20 = sld [smem:[#allocation2]]  ;;  %s648_s8 = sshll.u32 %s1185_s7, 4  ;;  %s649_s8 = int_to_ptr.hbm [resolvable:$true] %s648_s8 }
   0x8   :  { %v60_v5 = vld [vmem:[%s1178_s0] sm:$0xff]  ;;  %v63_v7 = vld [vmem:[%s1178_s0 + $0x18] sm:$0xff]  ;;  %v868_v10 = vld [vmem:[%s1181_s3 + $0x8] sm:$0xff]  ;;  %s713_s18 = sld [smem:[#allocation2 + $0x1]]  ;;  %s783_s9 = smov 8  }
   0x9   :  { %723 = vmatpush.msra.mxu3 %v66_v1  ;;  %94 = vmatpush.msra.mxu0 %v66_v1  ;;  %v110_v8 = vld [vmem:[%s1182_s4 + $0x20] sm:$0xff]  ;;  %v877_v12 = vld [vmem:[%s1181_s3 + $0x10] sm:$0xff]  ;;  %v886_v14 = vld [vmem:[%s1181_s3 + $0x18] sm:$0xff] }
   0xa   :  { %163 = vmatpush.msra.mxu1 %v110_v8  ;;  %v861_v9 = vld [vmem:[%s1181_s3] sm:$0xff]  ;;  %v915_v19 = vld [vmem:[%s1179_s1 + $0x8] sm:$0xff]  ;;  %v933_v21 = vld [vmem:[%s1179_s1 + $0x10] sm:$0xff] }
   0xb   :  { %724 = vmatpush.msra.mxu3 %v65_v2  ;;  %95 = vmatpush.msra.mxu0 %v65_v2  ;;  %v897_v16 = vld [vmem:[%s1181_s3 + $0x20] sm:$0xff]  ;;  %v926_v20 = vld [vmem:[%s1181_s3 + $0x28] sm:$0xff]  ;;  %v940_v22 = vld [vmem:[%s1181_s3 + $0x30] sm:$0xff] }
   0xc   :  { %665 = vmatmul.msk.f32.vlgmr.msra.gmra.mxu1 %vm123_vm1, %v861_v9  ;;  %v910_v18 = vld [vmem:[%s1179_s1] sm:$0xff]  ;;  %v947_v23 = vld [vmem:[%s1179_s1 + $0x18] sm:$0xff]  ;;  %v968_v26 = vld [vmem:[%s1179_s1 + $0x28] sm:$0xff] }
   0xd   :  { %725 = vmatpush.msra.mxu3 %v64_v3  ;;  %96 = vmatpush.msra.mxu0 %v64_v3  ;;  %v954_v24 = vld [vmem:[%s1181_s3 + $0x38] sm:$0xff]  ;;  %v961_v25 = vld [vmem:[%s1179_s1 + $0x20] sm:$0xff]  ;;  %v975_v27 = vld [vmem:[%s1179_s1 + $0x30] sm:$0xff]  ;;  %s305_s21 = sadd.f32 1.0, %s304_s20 }
   0xe   :  { %662 = vmatmul.msk.f32.vlgmr.msra.gmra.mxu3 %vm68_vm0, %v61_v4  ;;  %661 = vmatmul.msk.f32.vlgmr.msra.gmra.mxu0 %vm68_vm0, %v60_v5  ;;  %v982_v28 = vld [vmem:[%s1179_s1 + $0x38] sm:$0xff]  ;;  %v734_v43 = vld [vmem:[%s1183_s5] ss:$0 sm:$0xff]  ;;  %s540_s19 = sadd.f32 1.0, %s713_s18  ;;  %s781_s1 = smov [#allocation5]  }
   0xf   :  { %v114_v2 = vld [vmem:[%s1182_s4 + $0x40] sm:$0xff]  ;;  %v113_v3 = vld [vmem:[%s1182_s4 + $0x38] sm:$0xff]  ;;  %s646_s28 = sshll.u32 %s781_s1, 4  ;;  %s647_s28 = int_to_ptr.vmem [resolvable:$true] %s646_s28 }
  0x10   :  { %v998_v8 = vld [vmem:[%s1180_s2] sm:$0xff] }
  0x14   :  { %666 = vmatmul.msk.f32.gmra.mxu1 %vm123_vm1, %v868_v10 }
  0x16   :  { %663 = vmatmul.msk.f32.gmra.mxu3 %vm68_vm0, %v62_v6 }
  0x1c   :  { %667 = vmatmul.msk.f32.gmra.mxu1 %vm123_vm1, %v877_v12 }
  0x1e   :  { %664 = vmatmul.msk.f32.gmra.mxu3 %vm68_vm0, %v63_v7 }
  0x24   :  { %668 = vmatmul.msk.f32.gmra.mxu1 %vm123_vm1, %v886_v14 }
  0x2c   :  { %669 = vmatmul.msk.f32.gmra.mxu1 %vm123_vm1, %v897_v16 }
  0x34   :  { %670 = vmatmul.msk.f32.gmra.mxu1 %vm123_vm1, %v926_v20 }
  0x3c   :  { %671 = vmatmul.msk.f32.gmra.mxu1 %vm123_vm1, %v940_v22 }
  0x44   :  { %672 = vmatmul.msk.f32.gmra.mxu1 %vm123_vm1, %v954_v24 }
  0x89   :  { %v165_v29 = vpop.f32.mrf.mxu1 }
  0x8a   :  { %v166_v63 = vadd.f32 %v734_v43, %v165_v29  ;;  %v1005_v29 = vld [vmem:[%s1180_s2 + $0x8] sm:$0xff] }
  0x8b   :  { %v901_v17 = vpop.f32.mrf.mxu0 }
  0x91   :  { %v872_v11 = vpop.f32.mrf.mxu3  ;;  %v168_v30 = vpop.f32.mrf.mxu1 }
  0x92   :  { %v169_v57 = vadd.f32 %v734_v43, %v168_v30  ;;  %v1012_v30 = vld [vmem:[%s1180_s2 + $0x10] sm:$0xff] }
  0x99   :  { %v881_v13 = vpop.f32.mrf.mxu3  ;;  %v171_v31 = vpop.f32.mrf.mxu1 }
  0x9a   :  { %v172_v54 = vadd.f32 %v734_v43, %v171_v31  ;;  %v1019_v31 = vld [vmem:[%s1180_s2 + $0x18] sm:$0xff] }
  0xa1   :  { %v890_v15 = vpop.f32.mrf.mxu3  ;;  %v174_v33 = vpop.f32.mrf.mxu1 }
  0xa2   :  { %225 = vmatpush.msrb.mxu0 %v890_v15  ;;  %726 = vmatpush.msra.mxu2 %v890_v15  ;;  %v175_v51 = vadd.f32 %v734_v43, %v174_v33  ;;  %v111_v33 = vld [vmem:[%s1182_s4 + $0x28] sm:$0xff] }
  0xa4   :  { %226 = vmatpush.msrb.mxu0 %v881_v13  ;;  %727 = vmatpush.msra.mxu2 %v881_v13 }
  0xa6   :  { %227 = vmatpush.msrb.mxu0 %v872_v11  ;;  %728 = vmatpush.msra.mxu2 %v872_v11 }
  0xa8   :  { %228 = vmatpush.msrb.mxu0 %v901_v17  ;;  %729 = vmatpush.msra.mxu2 %v901_v17 }
  0xa9   :  { %673 = vmatmul.msk.f32.vlgmr.msrb.gmra.mxu0 %vm68_vm0, %v910_v18  ;;  %674 = vmatmul.msk.f32.vlgmr.msra.gmra.mxu2 %vm68_vm0, %v915_v19  ;;  %v177_v35 = vpop.f32.mrf.mxu1 }
  0xaa   :  { %v178_v48 = vadd.f32 %v734_v43, %v177_v35  ;;  %340 = vmatpush.msra.mxu0 %v114_v2  ;;  %v306_v35 = vstv %s305_s21 }
  0xac   :  { %341 = vmatpush.msra.mxu0 %v113_v3 }
  0xb1   :  { %675 = vmatmul.msk.f32.gmra.mxu2 %vm68_vm0, %v933_v21  ;;  %v180_v37 = vpop.f32.mrf.mxu1 }
  0xb2   :  { %v181_v46 = vadd.f32 %v734_v43, %v180_v37 }
  0xb9   :  { %676 = vmatmul.msk.f32.gmra.mxu2 %vm68_vm0, %v947_v23  ;;  %v183_v40 = vpop.f32.mrf.mxu1 }
  0xba   :  { %v184_v44 = vadd.f32 %v734_v43, %v183_v40 }
  0xc1   :  { %677 = vmatmul.msk.f32.gmra.mxu2 %vm68_vm0, %v961_v25  ;;  %v186_v42 = vpop.f32.mrf.mxu1 }
  0xc2   :  { %v187_v45 = vadd.f32 %v734_v43, %v186_v42  ;;  %v309_v42 = vmul.f32 %v306_v35, %v881_v13  ;;  %v115_v13 = vld [vmem:[%s1182_s4 + $0x48] sm:$0xff] }
  0xc9   :  { %678 = vmatmul.msk.f32.gmra.mxu2 %vm68_vm0, %v968_v26 }
  0xd1   :  { %679 = vmatmul.msk.f32.gmra.mxu2 %vm68_vm0, %v975_v27 }
  0xd9   :  { %680 = vmatmul.msk.f32.gmra.mxu2 %vm68_vm0, %v982_v28 }
 0x126   :  { %v230_v62 = vpop.f32.mrf.mxu0 }
 0x127   :  { %v231_v4 = vadd.f32 %v230_v62, %v166_v63 }
 0x129   :  { %v254_v7 = vmax.f32 %v231_v4, 0.0 }
 0x12c   :  { %v233_v32 = vpop.f32.mrf.mxu2 }
 0x12d   :  { %v234_v0 = vadd.f32 %v233_v32, %v169_v57  ;;  %v112_v32 = vld [vmem:[%s1182_s4 + $0x30] sm:$0xff] }
 0x12e   :  { %342 = vmatpush.msra.mxu0 %v112_v32 }
 0x12f   :  { %v255_v6 = vmax.f32 %v234_v0, 0.0 }
 0x130   :  { %343 = vmatpush.msra.mxu0 %v111_v33 }
 0x134   :  { %v236_v34 = vpop.f32.mrf.mxu2 }
 0x135   :  { %v237_v60 = vadd.f32 %v236_v34, %v172_v54  ;;  %v118_v34 = vld [vmem:[%s1182_s4 + $0x60] sm:$0xff] }
 0x137   :  { %v256_v5 = vmax.f32 %v237_v60, 0.0  ;;  %v407_v60 = vld [vmem:[%s1182_s4 + $0x68] sm:$0xff] }
 0x138   :  { %435 = vmatpush.msrb.mxu1 %v407_v60 }
 0x139   :  { %693 = vmatmul.msk.f32.vlgmr.msrb.gmra.mxu1 %vm123_vm1, %v861_v9  ;;  %v736_v9 = vld [vmem:[%s1183_s5 + $0x2] ss:$0 sm:$0xff] }
 0x13c   :  { %v239_v36 = vpop.f32.mrf.mxu2 }
 0x13d   :  { %v240_v58 = vadd.f32 %v239_v36, %v175_v51  ;;  %v307_v36 = vmul.f32 %v306_v35, %v901_v17 }
 0x13f   :  { %v257_v1 = vmax.f32 %v240_v58, 0.0 }
 0x141   :  { %694 = vmatmul.msk.f32.gmra.mxu1 %vm123_vm1, %v868_v10 }
 0x144   :  { %v242_v38 = vpop.f32.mrf.mxu2 }
 0x145   :  { %v243_v55 = vadd.f32 %v242_v38, %v178_v48 }
 0x147   :  { %v258_v61 = vmax.f32 %v243_v55, 0.0 }
 0x149   :  { %695 = vmatmul.msk.f32.gmra.mxu1 %vm123_vm1, %v877_v12 }
 0x14c   :  { %v245_v39 = vpop.f32.mrf.mxu2 }
 0x14d   :  { %v246_v52 = vadd.f32 %v245_v39, %v181_v46  ;;  %v308_v39 = vmul.f32 %v306_v35, %v872_v11  ;;  %v117_v11 = vld [vmem:[%s1182_s4 + $0x58] sm:$0xff] }
 0x14f   :  { %v259_v59 = vmax.f32 %v246_v52, 0.0 }
 0x151   :  { %696 = vmatmul.msk.f32.gmra.mxu1 %vm123_vm1, %v886_v14 }
 0x154   :  { %v248_v41 = vpop.f32.mrf.mxu2 }
 0x155   :  { %v249_v49 = vadd.f32 %v248_v41, %v184_v44 }
 0x157   :  { %v260_v56 = vmax.f32 %v249_v49, 0.0 }
 0x159   :  { %697 = vmatmul.msk.f32.gmra.mxu1 %vm123_vm1, %v897_v16 }
 0x15c   :  { %v251_v47 = vpop.f32.mrf.mxu2 }
 0x15d   :  { %v252_v50 = vadd.f32 %v251_v47, %v187_v45  ;;  %v310_v45 = vmul.f32 %v306_v35, %v890_v15  ;;  %v116_v47 = vld [vmem:[%s1182_s4 + $0x50] sm:$0xff]  ;;  %v735_v15 = vld [vmem:[%s1183_s5 + $0x1] ss:$0 sm:$0xff] }
 0x15f   :  { %v261_v53 = vmax.f32 %v252_v50, 0.0 }
 0x161   :  { %283 = vmatpush.msrb.mxu3 %v261_v53  ;;  %698 = vmatmul.msk.f32.gmra.mxu1 %vm123_vm1, %v926_v20 }
 0x163   :  { %284 = vmatpush.msrb.mxu3 %v260_v56 }
 0x165   :  { %285 = vmatpush.msrb.mxu3 %v259_v59 }
 0x167   :  { %286 = vmatpush.msrb.mxu3 %v258_v61 }
 0x169   :  { %287 = vmatpush.msrb.mxu3 %v257_v1  ;;  %699 = vmatmul.msk.f32.gmra.mxu1 %vm123_vm1, %v940_v22 }
 0x16b   :  { %288 = vmatpush.msrb.mxu3 %v256_v5 }
 0x16d   :  { %289 = vmatpush.msrb.mxu3 %v255_v6 }
 0x16f   :  { %290 = vmatpush.msrb.mxu3 %v254_v7 }
 0x170   :  { %681 = vmatmul.msk.f32.vlgmr.msrb.gmra.mxu3 %vm262_vm2, %v998_v8 }
 0x171   :  { %386 = vmatpush.msra.mxu3 %v118_v34  ;;  %700 = vmatmul.msk.f32.gmra.mxu1 %vm123_vm1, %v954_v24 }
 0x173   :  { %387 = vmatpush.msra.mxu3 %v117_v11 }
 0x175   :  { %388 = vmatpush.msra.mxu3 %v116_v47 }
 0x177   :  { %389 = vmatpush.msra.mxu3 %v115_v13 }
 0x178   :  { %682 = vmatmul.msk.f32.gmra.mxu3 %vm262_vm2, %v1005_v29 }
 0x180   :  { %683 = vmatmul.msk.f32.gmra.mxu3 %vm262_vm2, %v1012_v30 }
 0x188   :  { %684 = vmatmul.msk.f32.gmra.mxu3 %vm262_vm2, %v1019_v31 }
 0x1f3   :  { %v292_v37 = vpop.f32.mrf.mxu3 }
 0x1f4   :  { %v311_v38 = vadd.f32 %v307_v36, %v292_v37 }
 0x1f6   :  { %685 = vmatmul.msk.f32.vlgmr.msra.gmra.mxu0 %vm68_vm0, %v311_v38 }
 0x1fb   :  { %v295_v40 = vpop.f32.mrf.mxu3 }
 0x1fc   :  { %v312_v41 = vadd.f32 %v308_v39, %v295_v40 }
 0x1fe   :  { %686 = vmatmul.msk.f32.gmra.mxu0 %vm68_vm0, %v312_v41 }
 0x203   :  { %v298_v43 = vpop.f32.mrf.mxu3 }
 0x204   :  { %v313_v44 = vadd.f32 %v309_v42, %v298_v43 }
 0x206   :  { %687 = vmatmul.msk.f32.gmra.mxu0 %vm68_vm0, %v313_v44 }
 0x20b   :  { %v301_v46 = vpop.f32.mrf.mxu3 }
 0x20c   :  { %v314_v17 = vadd.f32 %v310_v45, %v301_v46 }
 0x20e   :  { %688 = vmatmul.msk.f32.gmra.mxu0 %vm68_vm0, %v314_v17 }
 0x273   :  { %v345_v48 = vpop.f32.mrf.mxu0 }
 0x274   :  { %v346_v49 = vadd.f32 %v735_v15, %v345_v48 }
 0x276   :  { %v357_v50 = vmax.f32 %v346_v49, 0.0 }
 0x278   :  { %689 = vmatmul.msk.f32.vlgmr.msra.gmra.mxu3 %vm68_vm0, %v357_v50 }
 0x27b   :  { %v348_v51 = vpop.f32.mrf.mxu0 }
 0x27c   :  { %v349_v52 = vadd.f32 %v735_v15, %v348_v51 }
 0x27e   :  { %v358_v53 = vmax.f32 %v349_v52, 0.0  ;;  %v411_v52 = vld [vmem:[%s1182_s4 + $0x88] sm:$0xff] }
 0x27f   :  { %575 = vmatpush.msrb.mxu3 %v411_v52 }
 0x280   :  { %690 = vmatmul.msk.f32.gmra.mxu3 %vm68_vm0, %v358_v53  ;;  %v410_v53 = vld [vmem:[%s1182_s4 + $0x80] sm:$0xff] }
 0x281   :  { %576 = vmatpush.msrb.mxu3 %v410_v53 }
 0x283   :  { %v351_v54 = vpop.f32.mrf.mxu0 }
 0x284   :  { %v352_v55 = vadd.f32 %v735_v15, %v351_v54 }
 0x286   :  { %v359_v56 = vmax.f32 %v352_v55, 0.0 }
 0x288   :  { %691 = vmatmul.msk.f32.gmra.mxu3 %vm68_vm0, %v359_v56 }
 0x28b   :  { %v354_v57 = vpop.f32.mrf.mxu0 }
 0x28c   :  { %v355_v58 = vadd.f32 %v735_v15, %v354_v57  ;;  %v409_v57 = vld [vmem:[%s1182_s4 + $0x78] sm:$0xff] }
 0x28d   :  { %577 = vmatpush.msrb.mxu3 %v409_v57 }
 0x28e   :  { %v360_v59 = vmax.f32 %v355_v58, 0.0  ;;  %v408_v58 = vld [vmem:[%s1182_s4 + $0x70] sm:$0xff] }
 0x28f   :  { %578 = vmatpush.msrb.mxu3 %v408_v58 }
 0x290   :  { %692 = vmatmul.msk.f32.gmra.mxu3 %vm68_vm0, %v360_v59 }
 0x2fb   :  { %v391_v61 = vpop.f32.mrf.mxu3 }
 0x2fc   :  { %v1081_v2 = vadd.f32 %v736_v9, %v391_v61 }
 0x2fe   :  { %v403_v3 = vmax.f32 %v1081_v2, 0.0 }
 0x303   :  { %v394_v62 = vpop.f32.mrf.mxu3 }
 0x304   :  { %v1078_v1 = vadd.f32 %v736_v9, %v394_v62 }
 0x306   :  { %v404_v20 = vmax.f32 %v1078_v1, 0.0  ;;  %v414_v1 = vld [vmem:[%s1182_s4 + $0xa0] sm:$0xff] }
 0x30b   :  { %v397_v63 = vpop.f32.mrf.mxu3 }
 0x30c   :  { %v1074_v0 = vadd.f32 %v736_v9, %v397_v63 }
 0x30e   :  { %v405_v16 = vmax.f32 %v1074_v0, 0.0  ;;  %v413_v0 = vld [vmem:[%s1182_s4 + $0x98] sm:$0xff] }
 0x313   :  { %v400_v10 = vpop.f32.mrf.mxu3 }
 0x314   :  { %v1076_v12 = vadd.f32 %v736_v9, %v400_v10 }
 0x316   :  { %v406_v14 = vmax.f32 %v1076_v12, 0.0  ;;  %v738_v12 = vld [vmem:[%s1183_s5 + $0x4] ss:$0 sm:$0xff] }
 0x318   :  { %473 = vmatpush.msrb.mxu0 %v406_v14 }
 0x31a   :  { %474 = vmatpush.msrb.mxu0 %v405_v16 }
 0x31c   :  { %475 = vmatpush.msrb.mxu0 %v404_v20 }
 0x31e   :  { %476 = vmatpush.msrb.mxu0 %v403_v3 }
 0x31f   :  { %701 = vmatmul.msk.f32.vlgmr.msrb.gmra.mxu0 %vm68_vm0, %v910_v18  ;;  %v437_v18 = vpop.f32.mrf.mxu1 }
 0x327   :  { %702 = vmatmul.msk.f32.gmra.mxu0 %vm68_vm0, %v915_v19  ;;  %v440_v19 = vpop.f32.mrf.mxu1 }
 0x32f   :  { %703 = vmatmul.msk.f32.gmra.mxu0 %vm68_vm0, %v933_v21  ;;  %v737_v21 = vld [vmem:[%s1183_s5 + $0x3] ss:$0 sm:$0xff]  ;;  %v443_v24 = vpop.f32.mrf.mxu1 }
 0x330   :  { %v438_v22 = vadd.f32 %v737_v21, %v437_v18  ;;  %v444_v46 = vadd.f32 %v737_v21, %v443_v24  ;;  %v441_v47 = vadd.f32 %v737_v21, %v440_v19 }
 0x337   :  { %704 = vmatmul.msk.f32.gmra.mxu0 %vm68_vm0, %v947_v23  ;;  %v446_v5 = vpop.f32.mrf.mxu1 }
 0x338   :  { %v447_v43 = vadd.f32 %v737_v21, %v446_v5 }
 0x33f   :  { %705 = vmatmul.msk.f32.gmra.mxu0 %vm68_vm0, %v961_v25 }
 0x347   :  { %706 = vmatmul.msk.f32.gmra.mxu0 %vm68_vm0, %v968_v26  ;;  %v449_v26 = vpop.f32.mrf.mxu1 }
 0x348   :  { %v450_v40 = vadd.f32 %v737_v21, %v449_v26 }
 0x34f   :  { %707 = vmatmul.msk.f32.gmra.mxu0 %vm68_vm0, %v975_v27  ;;  %v452_v32 = vpop.f32.mrf.mxu1 }
 0x350   :  { %v453_v38 = vadd.f32 %v737_v21, %v452_v32 }
 0x357   :  { %708 = vmatmul.msk.f32.gmra.mxu0 %vm68_vm0, %v982_v28  ;;  %v455_v34 = vpop.f32.mrf.mxu1 }
 0x358   :  { %v456_v36 = vadd.f32 %v737_v21, %v455_v34 }
 0x35f   :  { %v458_v35 = vpop.f32.mrf.mxu1 }
 0x360   :  { %v459_v37 = vadd.f32 %v737_v21, %v458_v35 }
 0x39c   :  { %v478_v23 = vpop.f32.mrf.mxu0 }
 0x39d   :  { %v479_v4 = vadd.f32 %v478_v23, %v438_v22 }
 0x39f   :  { %v502_v56 = vmax.f32 %v479_v4, 0.0 }
 0x3a4   :  { %v481_v25 = vpop.f32.mrf.mxu0 }
 0x3a5   :  { %v482_v50 = vadd.f32 %v481_v25, %v441_v47 }
 0x3a7   :  { %v503_v55 = vmax.f32 %v482_v50, 0.0 }
 0x3ac   :  { %v484_v6 = vpop.f32.mrf.mxu0 }
 0x3ad   :  { %v485_v48 = vadd.f32 %v484_v6, %v444_v46 }
 0x3af   :  { %v504_v54 = vmax.f32 %v485_v48, 0.0 }
 0x3b4   :  { %v487_v7 = vpop.f32.mrf.mxu0 }
 0x3b5   :  { %v488_v13 = vadd.f32 %v487_v7, %v447_v43  ;;  %v739_v7 = vld [vmem:[%s1183_s5 + $0x5] ss:$0 sm:$0xff]  ;;  %s782_s5 = smov 128  }
 0x3b7   :  { %v505_v51 = vmax.f32 %v488_v13, 0.0 }
 0x3bc   :  { %v490_v27 = vpop.f32.mrf.mxu0 }
 0x3bd   :  { %v491_v17 = vadd.f32 %v490_v27, %v450_v40 }
 0x3bf   :  { %v506_v49 = vmax.f32 %v491_v17, 0.0 }
 0x3c4   :  { %v493_v33 = vpop.f32.mrf.mxu0 }
 0x3c5   :  { %v494_v44 = vadd.f32 %v493_v33, %v453_v38 }
 0x3c7   :  { %v507_v15 = vmax.f32 %v494_v44, 0.0 }
 0x3cc   :  { %v496_v28 = vpop.f32.mrf.mxu0 }
 0x3cd   :  { %v497_v41 = vadd.f32 %v496_v28, %v456_v36 }
 0x3cf   :  { %v508_v11 = vmax.f32 %v497_v41, 0.0 }
 0x3d4   :  { %v499_v39 = vpop.f32.mrf.mxu0 }
 0x3d5   :  { %v500_v42 = vadd.f32 %v499_v39, %v459_v37 }
 0x3d7   :  { %v509_v45 = vmax.f32 %v500_v42, 0.0 }
 0x3d9   :  { %518 = vmatpush.msrb.mxu2 %v509_v45 }
 0x3db   :  { %519 = vmatpush.msrb.mxu2 %v508_v11 }
 0x3dd   :  { %520 = vmatpush.msrb.mxu2 %v507_v15 }
 0x3df   :  { %521 = vmatpush.msrb.mxu2 %v506_v49 }
 0x3e1   :  { %522 = vmatpush.msrb.mxu2 %v505_v51 }
 0x3e3   :  { %523 = vmatpush.msrb.mxu2 %v504_v54 }
 0x3e5   :  { %524 = vmatpush.msrb.mxu2 %v503_v55 }
 0x3e7   :  { %525 = vmatpush.msrb.mxu2 %v502_v56 }
 0x3e8   :  { %709 = vmatmul.msk.f32.vlgmr.msrb.gmra.mxu2 %vm262_vm2, %v998_v8  ;;  %v415_v8 = vld [vmem:[%s1182_s4 + $0xa8] sm:$0xff] }
 0x3e9   :  { %621 = vmatpush.msra.mxu2 %v415_v8 }
 0x3eb   :  { %622 = vmatpush.msra.mxu2 %v414_v1 }
 0x3ed   :  { %623 = vmatpush.msra.mxu2 %v413_v0 }
 0x3f0   :  { %710 = vmatmul.msk.f32.gmra.mxu2 %vm262_vm2, %v1005_v29  ;;  %v541_v29 = vstv %s540_s19 }
 0x3f1   :  { %v543_v60 = vmul.f32 %v541_v29, %v404_v20  ;;  %v544_v63 = vmul.f32 %v541_v29, %v405_v16  ;;  %v545_v2 = vmul.f32 %v541_v29, %v406_v14  ;;  %v412_v16 = vld [vmem:[%s1182_s4 + $0x90] sm:$0xff] }
 0x3f2   :  { %624 = vmatpush.msra.mxu2 %v412_v16 }
 0x3f8   :  { %711 = vmatmul.msk.f32.gmra.mxu2 %vm262_vm2, %v1012_v30  ;;  %v542_v30 = vmul.f32 %v541_v29, %v403_v3 }
 0x400   :  { %712 = vmatmul.msk.f32.gmra.mxu2 %vm262_vm2, %v1019_v31 }
 0x46b   :  { %v527_v31 = vpop.f32.mrf.mxu2 }
 0x46c   :  { %v546_v59 = vadd.f32 %v542_v30, %v527_v31 }
 0x46e   :  { %714 = vmatmul.msk.f32.vlgmr.msrb.gmra.mxu3 %vm68_vm0, %v546_v59 }
 0x473   :  { %v530_v61 = vpop.f32.mrf.mxu2 }
 0x474   :  { %v547_v62 = vadd.f32 %v543_v60, %v530_v61 }
 0x476   :  { %715 = vmatmul.msk.f32.gmra.mxu3 %vm68_vm0, %v547_v62 }
 0x47b   :  { %v533_v9 = vpop.f32.mrf.mxu2 }
 0x47c   :  { %v548_v10 = vadd.f32 %v544_v63, %v533_v9 }
 0x47e   :  { %716 = vmatmul.msk.f32.gmra.mxu3 %vm68_vm0, %v548_v10 }
 0x483   :  { %v536_v3 = vpop.f32.mrf.mxu2 }
 0x484   :  { %v549_v18 = vadd.f32 %v545_v2, %v536_v3 }
 0x486   :  { %717 = vmatmul.msk.f32.gmra.mxu3 %vm68_vm0, %v549_v18 }
 0x4f1   :  { %v580_v14 = vpop.f32.mrf.mxu3 }
 0x4f2   :  { %v581_v20 = vadd.f32 %v738_v12, %v580_v14 }
 0x4f4   :  { %v592_v19 = vmax.f32 %v581_v20, 0.0 }
 0x4f6   :  { %718 = vmatmul.msk.f32.vlgmr.msra.gmra.mxu2 %vm68_vm0, %v592_v19 }
 0x4f9   :  { %v583_v21 = vpop.f32.mrf.mxu3 }
 0x4fa   :  { %v584_v22 = vadd.f32 %v738_v12, %v583_v21 }
 0x4fc   :  { %v593_v23 = vmax.f32 %v584_v22, 0.0 }
 0x4fe   :  { %719 = vmatmul.msk.f32.gmra.mxu2 %vm68_vm0, %v593_v23 }
 0x501   :  { %v586_v24 = vpop.f32.mrf.mxu3 }
 0x502   :  { %v587_v4 = vadd.f32 %v738_v12, %v586_v24 }
 0x504   :  { %v594_v25 = vmax.f32 %v587_v4, 0.0 }
 0x506   :  { %720 = vmatmul.msk.f32.gmra.mxu2 %vm68_vm0, %v594_v25 }
 0x509   :  { %v589_v5 = vpop.f32.mrf.mxu3 }
 0x50a   :  { %v590_v6 = vadd.f32 %v738_v12, %v589_v5 }
 0x50c   :  { %v595_v26 = vmax.f32 %v590_v6, 0.0 }
 0x50e   :  { %721 = vmatmul.msk.f32.gmra.mxu2 %vm68_vm0, %v595_v26 }
 0x579   :  { %v626_v32 = vpop.f32.mrf.mxu2 }
 0x57a   :  { %v627_v27 = vadd.f32 %v739_v7, %v626_v32 }
 0x57c   :  { %638 = vst.msk [vmem:[#allocation5] sm:$0xff] %vm68_vm0, %v627_v27 }
 0x581   :  { %v629_v33 = vpop.f32.mrf.mxu2 }
 0x582   :  { %v630_v34 = vadd.f32 %v739_v7, %v629_v33 }
 0x584   :  { %639 = vst.msk [vmem:[#allocation5 + $0x8] sm:$0xff] %vm68_vm0, %v630_v34 }
 0x589   :  { %v632_v28 = vpop.f32.mrf.mxu2 }
 0x58a   :  { %v633_v35 = vadd.f32 %v739_v7, %v632_v28 }
 0x58c   :  { %640 = vst.msk [vmem:[#allocation5 + $0x10] sm:$0xff] %vm68_vm0, %v633_v35 }
 0x591   :  { %v635_v36 = vpop.f32.mrf.mxu2 }
 0x592   :  { %v636_v37 = vadd.f32 %v739_v7, %v635_v36 }
 0x594   :  { %641 = vst.msk [vmem:[#allocation5 + $0x18] sm:$0xff] %vm68_vm0, %v636_v37 }
 0x595   :  { %654 = dma.vmem_to_hbm [thread:$0]  %s647_s28, 512, %s649_s8, [#allocation3], %s782_s5, %s782_s5, %s783_s9  }
 0x596   :  { %778 = dma.done.wait [#allocation3], 512  }
 0x597   :  { %779 = vsyncadd [#allocation3], 4294966784 }
 0x598   :  { %659 = vsyncpa [#allocation3], 1 }
 0x599   :  { %660 = vsyncpa [#allocation4], 1 }

</bundles_post_ra>
